<compile_context>
chip_gen: v7x
topology: tpu7x:2x2x1
jax: 0.10.0
libtpu: 0.0.40
codegen_flags: <defaults>
</compile_context>

<pallas_src>
import math
import functools

import jax
import jax.numpy as jnp
from jax.experimental import pallas as pl
from jax.experimental.pallas import tpu as pltpu


def _entropy_kernel(x_ref, out_ref, acc_ref, *,
                    inv_norm, scale, hw, tile_m, ragged, approx_recip):
    i = pl.program_id(1)                 # pixel-tile index (reduction axis, last)
    i_last = pl.num_programs(1) - 1

    @pl.when(i == 0)
    def _():
        acc_ref[...] = jnp.zeros_like(acc_ref)

    x = x_ref[...].astype(jnp.float32)                        # (BN, C, TM)

    # Numerically-stable channel-softmax entropy, algebraically simplified:
    #   -sum_c p*logp = log(s) - sum_c(e*t)/s,  t = x - max, e = exp(t), s = sum(e)
    mx = jnp.max(x, axis=1, keepdims=True)                    # (BN, 1, TM)
    t = x - mx                                                # (BN, C, TM)
    e = jnp.exp(t)                                            # (BN, C, TM)
    s = jnp.sum(e, axis=1, keepdims=True)                     # (BN, 1, TM)
    et = jnp.sum(e * t, axis=1, keepdims=True)                # (BN, 1, TM)
    ent = jnp.log(s) - et * pl.reciprocal(s, approx=approx_recip)

    ent = ent * inv_norm
    ent = ent * ent + 1e-8
    ent = ent * ent                                           # (BN, 1, TM)

    if ragged:
        # Mask the padded lanes BEFORE any reduction, only on the ragged last tile.
        @pl.when(i != i_last)
        def _():
            acc_ref[...] += jnp.sum(ent, axis=0)

        @pl.when(i == i_last)
        def _():
            col = i * tile_m + jax.lax.broadcasted_iota(
                jnp.int32, (1, 1, tile_m), 2)
            acc_ref[...] += jnp.sum(jnp.where(col < hw, ent, 0.0), axis=0)
    else:
        acc_ref[...] += jnp.sum(ent, axis=0)

    @pl.when(i == i_last)
    def _():
        # one cross-lane reduce + scale per batch-block; lane-dense (8,128) store
        total = jnp.sum(acc_ref[...], keepdims=True) * scale          # (1, 1)
        out_ref[...] = jnp.broadcast_to(total, (1, 8, 128))


def _round_up(x, m):
    return ((x + m - 1) // m) * m


def _pick_tiling(N, C, HW, itemsize, vmem_budget_bytes):
    """Pick (BN, TM) so 2x double-buffered input tiles + the (1,TM) f32
    accumulator stay under `vmem_budget_bytes` (safe w.r.t. v5e's 16 MiB
    default scoped VMEM; v6e/v7x have >= 32 MiB)."""
    gran = 32 // itemsize                          # sublane granularity: f32->8, bf16->16
    c_pad = _round_up(C, gran)
    in_px = c_pad * itemsize                       # input bytes / pixel / image (padded)
    acc_px = 8 * 4                                 # (1,TM) f32 acc, sublane-padded

    hw_pad = _round_up(HW, 128)
    whole_img = 2 * in_px * hw_pad + acc_px * hw_pad
    if whole_img <= vmem_budget_bytes:
        # Whole image per step (contiguous DMA); fold as many batch items as fit.
        tm = HW
        bn_cap = max(1, (vmem_budget_bytes - acc_px * hw_pad) // (2 * in_px * hw_pad))
        bn = 1
        for cand in range(min(N, bn_cap), 0, -1):
            if N % cand == 0:
                bn = cand
                break
        return bn, tm
    # Large image: BN = 1, largest lane-aligned pixel tile under the budget.
    tm = (vmem_budget_bytes // (2 * in_px + acc_px)) // 128 * 128
    tm = max(128, min(tm, max(128, HW // 128 * 128)))
    return 1, tm


def entropy_loss_pallas(pred, lambda_entropy=0.005, num_classes=13,
                        approx_recip=True, vmem_budget_bytes=12 << 20):
    """pred: (N, C, H, W) float array (NCHW, like the PyTorch module)."""
    N, C, H, W = pred.shape
    assert C == num_classes

    # normalization factor = entropy of the uniform distribution = log(C)
    # (exactly what __get_normalization_factor computes)
    norm = math.log(float(num_classes))

    HW = H * W
    x = pred.reshape(N, C, HW)                     # free (metadata-only) reshape

    itemsize = jnp.dtype(pred.dtype).itemsize
    BN, TM = _pick_tiling(N, C, HW, itemsize, vmem_budget_bytes)
    n_bblocks = N // BN
    n_tiles = pl.cdiv(HW, TM)
    ragged = (HW % TM) != 0

    kernel = functools.partial(
        _entropy_kernel,
        inv_norm=1.0 / norm,
        scale=float(lambda_entropy) / float(N * HW),
        hw=HW,
        tile_m=TM,
        ragged=ragged,
        approx_recip=approx_recip,
    )

    partials = pl.pallas_call(
        kernel,
        out_shape=jax.ShapeDtypeStruct((n_bblocks, 8, 128), jnp.float32),
        grid_spec=pltpu.PrefetchScalarGridSpec(
            num_scalar_prefetch=0,
            grid=(n_bblocks, n_tiles),
            in_specs=[pl.BlockSpec((BN, C, TM), lambda b, i: (b, 0, i))],
            out_specs=pl.BlockSpec((1, 8, 128), lambda b, i: (b, 0, 0)),
            scratch_shapes=[pltpu.VMEM((1, TM), jnp.float32)],
        ),
        compiler_params=pltpu.CompilerParams(
            dimension_semantics=("parallel", "arbitrary")),
    )(x)

    # Each batch-block row holds its own (already lambda/M-scaled) partial sum,
    # replicated across lanes; the final reduce is a handful of scalars.
    return jnp.sum(partials[:, 0, 0])


def entropy_loss_ref(pred, lambda_entropy=0.005, num_classes=13):
    """Pure-JAX reference mirroring the PyTorch module."""
    norm = math.log(float(num_classes))
    p = jax.nn.softmax(pred, axis=1)
    logp = jax.nn.log_softmax(pred, axis=1)
    ent = -jnp.sum(p * logp, axis=1) / norm
    ent = ent ** 2.0 + 1e-08
    ent = ent ** 2.0
    return jnp.mean(ent) * lambda_entropy


if __name__ == "__main__":
    key = jax.random.PRNGKey(0)

    # Case 1: small feature map (batch-blocked, whole-image tile), f32.
    N, C, H, W = 2, 13, 16, 16
    pred = jax.random.normal(key, (N, C, H, W), dtype=jnp.float32)
    ref = entropy_loss_ref(pred)

    loss_exact = jax.block_until_ready(entropy_loss_pallas(pred, approx_recip=False))
    assert jnp.allclose(loss_exact, ref, rtol=1e-4, atol=1e-7), (loss_exact, ref)

    loss_fast = jax.block_until_ready(entropy_loss_pallas(pred))   # approx reciprocal
    assert jnp.allclose(loss_fast, ref, rtol=1e-2, atol=1e-8), (loss_fast, ref)

    # Case 2: force the TM < HW ragged/masked path with a tiny VMEM budget.
    pred2 = jax.random.normal(jax.random.PRNGKey(1), (2, 13, 33, 33),
                              dtype=jnp.float32)
    ref2 = entropy_loss_ref(pred2)
    loss2 = jax.block_until_ready(
        entropy_loss_pallas(pred2, approx_recip=False, vmem_budget_bytes=100_000))
    assert jnp.allclose(loss2, ref2, rtol=1e-4, atol=1e-7), (loss2, ref2)

    # Case 3: bf16 input (half the HBM traffic), odd spatial size (full-dim lane tile).
    pred3 = jax.random.normal(jax.random.PRNGKey(2), (2, 13, 9, 9),
                              dtype=jnp.float32).astype(jnp.bfloat16)
    ref3 = entropy_loss_ref(pred3.astype(jnp.float32))
    loss3 = jax.block_until_ready(entropy_loss_pallas(pred3))
    assert jnp.allclose(loss3, ref3, rtol=1e-2, atol=1e-8), (loss3, ref3)

    print("KERNEL_OK")
</pallas_src>

<mosaic_0001>
module attributes {stable_mosaic.version = 11 : i64} {
  func.func @_entropy_kernel(%arg0: i32, %arg1: i32, %arg2: memref<2x13x256xf32, #tpu.memory_space<vmem>>, %arg3: memref<1x8x128xf32, #tpu.memory_space<vmem>>, %arg4: memref<1x256xf32, #tpu.memory_space<vmem>>) attributes {dimension_semantics = [#tpu.dimension_semantics<parallel>, #tpu.dimension_semantics<arbitrary>], iteration_bounds = array<i64: 1, 1>, scalar_prefetch = 0 : i64, scratch_operands = 1 : i64, tpu.core_type = #tpu.core_type<tc>, window_params = [{transform_indices = @transform_0, window_bounds = array<i64: 2, 13, 256>}, {transform_indices = @transform_1, window_bounds = array<i64: 1, 8, 128>}]} {
    %c0_i32 = arith.constant 0 : i32
    %0 = arith.cmpi eq, %arg1, %c0_i32 : i32
    %1 = arith.extui %0 : i1 to i32
    %c0_i32_0 = arith.constant 0 : i32
    %2 = arith.cmpi ne, %1, %c0_i32_0 : i32
    scf.if %2 {
      %cst_14 = arith.constant 0.000000e+00 : f32
      %31 = vector.broadcast %cst_14 : f32 to vector<1x256xf32>
      %c0_15 = arith.constant 0 : index
      %c0_16 = arith.constant 0 : index
      %32 = vector.load %arg4[%c0_15, %c0_16] : memref<1x256xf32, #tpu.memory_space<vmem>>, vector<1x256xf32>
      tpu.vector_store %arg4[%c0_15, %c0_16], %31 {strides = array<i32>} : memref<1x256xf32, #tpu.memory_space<vmem>>, vector<1x256xf32>,
    } else {
    }
    %c0 = arith.constant 0 : index
    %c0_1 = arith.constant 0 : index
    %c0_2 = arith.constant 0 : index
    %3 = vector.load %arg2[%c0, %c0_1, %c0_2] : memref<2x13x256xf32, #tpu.memory_space<vmem>>, vector<2x13x256xf32>
    %cst = arith.constant dense<0xFF800000> : vector<2x256xf32>
    %4 = vector.multi_reduction <maximumf>, %3, %cst [1] : vector<2x13x256xf32> to vector<2x256xf32>
    %5 = vector.shape_cast %4 : vector<2x256xf32> to vector<2x1x256xf32>
    %6 = vector.broadcast %5 : vector<2x1x256xf32> to vector<2x13x256xf32>
    %7 = arith.subf %3, %6 : vector<2x13x256xf32>
    %8 = math.exp %7 : vector<2x13x256xf32>
    %cst_3 = arith.constant dense<0.000000e+00> : vector<2x256xf32>
    %9 = vector.multi_reduction <add>, %8, %cst_3 [1] : vector<2x13x256xf32> to vector<2x256xf32>
    %10 = vector.shape_cast %9 : vector<2x256xf32> to vector<2x1x256xf32>
    %11 = arith.mulf %8, %7 : vector<2x13x256xf32>
    %cst_4 = arith.constant dense<0.000000e+00> : vector<2x256xf32>
    %12 = vector.multi_reduction <add>, %11, %cst_4 [1] : vector<2x13x256xf32> to vector<2x256xf32>
    %13 = vector.shape_cast %12 : vector<2x256xf32> to vector<2x1x256xf32>
    %14 = math.log %10 : vector<2x1x256xf32>
    %15 = tpu.reciprocal %10 : vector<2x1x256xf32> -> vector<2x1x256xf32>
    %16 = arith.mulf %13, %15 : vector<2x1x256xf32>
    %17 = arith.subf %14, %16 : vector<2x1x256xf32>
    %cst_5 = arith.constant 0.38987124 : f32
    %18 = vector.broadcast %cst_5 : f32 to vector<2x1x256xf32>
    %19 = arith.mulf %17, %18 : vector<2x1x256xf32>
    %20 = arith.mulf %19, %19 : vector<2x1x256xf32>
    %cst_6 = arith.constant 9.99999993E-9 : f32
    %21 = vector.broadcast %cst_6 : f32 to vector<2x1x256xf32>
    %22 = arith.addf %20, %21 : vector<2x1x256xf32>
    %23 = arith.mulf %22, %22 : vector<2x1x256xf32>
    %c0_7 = arith.constant 0 : index
    %c0_8 = arith.constant 0 : index
    %24 = vector.load %arg4[%c0_7, %c0_8] : memref<1x256xf32, #tpu.memory_space<vmem>>, vector<1x256xf32>
    %cst_9 = arith.constant dense<0.000000e+00> : vector<1x256xf32>
    %25 = vector.multi_reduction <add>, %23, %cst_9 [0] : vector<2x1x256xf32> to vector<1x256xf32>
    %26 = arith.addf %24, %25 : vector<1x256xf32>
    %c0_10 = arith.constant 0 : index
    %c0_11 = arith.constant 0 : index
    %27 = vector.load %arg4[%c0_10, %c0_11] : memref<1x256xf32, #tpu.memory_space<vmem>>, vector<1x256xf32>
    tpu.vector_store %arg4[%c0_10, %c0_11], %26 {strides = array<i32>} : memref<1x256xf32, #tpu.memory_space<vmem>>, vector<1x256xf32>,
    %c0_i32_12 = arith.constant 0 : i32
    %28 = arith.cmpi eq, %arg1, %c0_i32_12 : i32
    %29 = arith.extui %28 : i1 to i32
    %c0_i32_13 = arith.constant 0 : i32
    %30 = arith.cmpi ne, %29, %c0_i32_13 : i32
    scf.if %30 {
      %c0_14 = arith.constant 0 : index
      %c0_15 = arith.constant 0 : index
      %31 = vector.load %arg4[%c0_14, %c0_15] : memref<1x256xf32, #tpu.memory_space<vmem>>, vector<1x256xf32>
      %32 = vector.shape_cast %31 : vector<1x256xf32> to vector<1x1x256xf32>
      %cst_16 = arith.constant dense<0.000000e+00> : vector<1xf32>
      %33 = vector.multi_reduction <add>, %32, %cst_16 [1, 2] : vector<1x1x256xf32> to vector<1xf32>
      %34 = vector.shape_cast %33 : vector<1xf32> to vector<1x1x1xf32>
      %35 = vector.extract %34[0, 0, 0] : f32 from vector<1x1x1xf32>
      %36 = vector.broadcast %35 : f32 to vector<1x1xf32>
      %cst_17 = arith.constant 9.76562478E-6 : f32
      %37 = vector.broadcast %cst_17 : f32 to vector<1x1xf32>
      %38 = arith.mulf %36, %37 : vector<1x1xf32>
      %39 = vector.shape_cast %38 : vector<1x1xf32> to vector<1x1x1xf32>
      %40 = vector.broadcast %39 : vector<1x1x1xf32> to vector<1x8x128xf32>
      %c0_18 = arith.constant 0 : index
      %c0_19 = arith.constant 0 : index
      %c0_20 = arith.constant 0 : index
      %41 = vector.load %arg3[%c0_18, %c0_19, %c0_20] : memref<1x8x128xf32, #tpu.memory_space<vmem>>, vector<1x8x128xf32>
      tpu.vector_store %arg3[%c0_18, %c0_19, %c0_20], %40 {strides = array<i32>} : memref<1x8x128xf32, #tpu.memory_space<vmem>>, vector<1x8x128xf32>,
    } else {
    }
    return
  }
  func.func @transform_0(%arg0: i32, %arg1: i32) -> (i32, i32, i32) {
    %c0_i32 = arith.constant 0 : i32
    %c0_i32_0 = arith.constant 0 : i32
    return %arg0, %c0_i32, %arg1 : i32, i32, i32
  }
  func.func @transform_1(%arg0: i32, %arg1: i32) -> (i32, i32, i32) {
    %c0_i32 = arith.constant 0 : i32
    %c0_i32_0 = arith.constant 0 : i32
    %c0_i32_1 = arith.constant 0 : i32
    return %arg0, %c0_i32, %c0_i32_0 : i32, i32, i32
  }
}

</mosaic_0001>

<bundles_post_ra>
// kernel: tpu_custom_call.1
= control target key start
LH: loop header
LB: loop body
LE: loop exit
PB: predicated region body
PF: predicated region fallthrough
CT: control target
= control target key end

     0   :  { %v13_v0 = vlaneseq  ;;  %vm26_vm0 = vcmask 1044480   ;;  %v324_v13 = vmov 0.0   ;;  %s395_s0 = inlined_call_operand.vmem [shape: f32[2,13,256], index: 0, kind: input, shape index: {}]   ;;  %s396_s1 = inlined_call_operand.hbm [shape: f32[1,8,128], index: 1, kind: output, shape index: {}]  }
   0x1   :  { %v18_v1 = vld [vmem:[%s395_s0] sm:$0xff]  ;;  %v19_v2 = vld [vmem:[%s395_s0 + $0x8] sm:$0xff]  ;;  %v20_v3 = vld [vmem:[%s395_s0 + $0x10] sm:$0x1f] }
   0x2   :  { %v21_v4 = vld [vmem:[%s395_s0 + $0x18] sm:$0x1f]  ;;  %v22_v5 = vld [vmem:[%s395_s0 + $0x20] sm:$0xff]  ;;  %v23_v6 = vld [vmem:[%s395_s0 + $0x28] sm:$0xff]  ;;  %v27_v7 = vsel %vm26_vm0, %v20_v3, -inf  ;;  %vm357_vm1 = vcmp.lt.s32.totalorder %v13_v0, 256 }
   0x3   :  { %v24_v9 = vld [vmem:[%s395_s0 + $0x30] sm:$0x1f]  ;;  %v25_v10 = vld [vmem:[%s395_s0 + $0x38] sm:$0x1f]  ;;  %v28_v11 = vmax.f32 %v18_v1, %v27_v7  ;;  %v35_v12 = vsel %vm26_vm0, %v21_v4, -inf }
   0x4   :  { %17 = vst.msk [vmem:[#allocation2] sm:$0x3] %vm357_vm1, %v324_v13  ;;  %v36_v14 = vmax.f32 %v19_v2, %v35_v12  ;;  %v43_v15 = vsel %vm26_vm0, %v24_v9, -inf  ;;  %v51_v16 = vsel %vm26_vm0, %v25_v10, -inf }
   0x5   :  { %6 = vsyncpa [#allocation4], 0  ;;  %v29_v17 = vrot.slane %v28_v11, 4  ;;  %v44_v18 = vmax.f32 %v22_v5, %v43_v15  ;;  %v52_v19 = vmax.f32 %v23_v6, %v51_v16  ;;  %vm233_vm2 = vcmask 1040384   ;;  %s326_s0 = smov [#allocation3]  }
   0x6   :  { %v37_v20 = vrot.slane %v36_v14, 4  ;;  %s255_s22 = sshll.u32 %s326_s0, 4  ;;  %s256_s22 = int_to_ptr.vmem [resolvable:$true] %s255_s22 }
   0x7   :  { %v30_v21 = vmax.f32 %v28_v11, %v29_v17  ;;  %v45_v22 = vrot.slane %v44_v18, 4  ;;  %v53_v23 = vrot.slane %v52_v19, 4  ;;  %s300_s24 = scalar_lea.vmem %s256_s22, 128  ;;  %p305_p1 = scmp.lt.s32.totalorder %s256_s22, %s256_s22 }
   0x8   :  { %v38_v24 = vmax.f32 %v36_v14, %v37_v20  ;;  %p301_p0 = scmp.ne.s32.totalorder %s256_s22, %s300_s24  ;;  %p306_p2 = scmp.lt.s32.totalorder %s300_s24, %s300_s24 }
   0x9   :  { %v31_v25 = vrot.slane %v30_v21, 2  ;;  %v46_v26 = vmax.f32 %v44_v18, %v45_v22  ;;  %v54_v27 = vmax.f32 %v52_v19, %v53_v23 }
   0xa   :  { %v39_v28 = vrot.slane %v38_v24, 2  ;;  %p307_p3 = por %p306_p2, %p305_p1 }
   0xb   :  { %v32_v29 = vmax.f32 %v30_v21, %v31_v25  ;;  %v47_v30 = vrot.slane %v46_v26, 2  ;;  %v55_v31 = vrot.slane %v54_v27, 2 }
   0xc   :  { %v40_v32 = vmax.f32 %v38_v24, %v39_v28  ;;  %p308_p4 = pnand %p307_p3, %p301_p0 }
   0xd   :  { %v33_v33 = vrot.slane %v32_v29, 1  ;;  %v48_v34 = vmax.f32 %v46_v26, %v47_v30  ;;  %v56_v35 = vmax.f32 %v54_v27, %v55_v31 }
   0xe   :  { %v41_v36 = vrot.slane %v40_v32, 1 }
   0xf   :  { %v34_v37 = vmax.f32 %v32_v29, %v33_v33  ;;  %v49_v38 = vrot.slane %v48_v34, 1  ;;  %v57_v39 = vrot.slane %v56_v35, 1 }
  0x10   :  { %v42_v40 = vmax.f32 %v40_v32, %v41_v36 }
  0x11   :  { %v50_v41 = vmax.f32 %v48_v34, %v49_v38  ;;  %v58_v42 = vmax.f32 %v56_v35, %v57_v39  ;;  %v59_v43 = vsub.f32 %v18_v1, %v34_v37  ;;  %v61_v44 = vsub.f32 %v20_v3, %v34_v37 }
  0x12   :  { %v60_v45 = vsub.f32 %v19_v2, %v42_v40  ;;  %v62_v46 = vsub.f32 %v21_v4, %v42_v40 }
  0x13   :  { %v63_v47 = vsub.f32 %v22_v5, %v50_v41  ;;  %v64_v48 = vsub.f32 %v23_v6, %v58_v42  ;;  %v65_v49 = vsub.f32 %v24_v9, %v50_v41  ;;  %v67_v50 = vmul.f32 1.442695, %v59_v43 }
  0x14   :  { %v69_v51 = vmul.f32 1.442695, %v60_v45  ;;  %v71_v52 = vmul.f32 1.442695, %v61_v44  ;;  %v66_v53 = vsub.f32 %v25_v10, %v58_v42  ;;  %v73_v54 = vmul.f32 1.442695, %v62_v46 }
  0x15   :  { %268 = vpow2.f32 %v67_v50  ;;  %v75_v55 = vmul.f32 1.442695, %v63_v47  ;;  %v77_v56 = vmul.f32 1.442695, %v64_v48  ;;  %v79_v57 = vmul.f32 1.442695, %v65_v49 }
  0x16   :  { %270 = vpow2.f32 %v69_v51  ;;  %v81_v58 = vmul.f32 1.442695, %v66_v53 }
  0x17   :  { %272 = vpow2.f32 %v71_v52 }
  0x18   :  { %274 = vpow2.f32 %v73_v54 }
  0x19   :  { %276 = vpow2.f32 %v75_v55 }
  0x1a   :  { %278 = vpow2.f32 %v77_v56 }
  0x1b   :  { %280 = vpow2.f32 %v79_v57 }
  0x1c   :  { %282 = vpow2.f32 %v81_v58 }
  0x1f   :  { %v269_v59 = vpop.eup %268 }
  0x20   :  { %v271_v60 = vpop.eup %270  ;;  %v115_v62 = vmul.f32 %v269_v59, %v59_v43 }
  0x21   :  { %v273_v61 = vpop.eup %272  ;;  %v116_v2 = vmul.f32 %v271_v60, %v60_v45 }
  0x22   :  { %v275_v63 = vpop.eup %274  ;;  %v83_v1 = vsel %vm26_vm0, %v273_v61, 0.0  ;;  %v117_v3 = vmul.f32 %v273_v61, %v61_v44 }
  0x23   :  { %v277_v4 = vpop.eup %276  ;;  %v84_v5 = vadd.f32 %v269_v59, %v83_v1  ;;  %v91_v6 = vsel %vm26_vm0, %v275_v63, 0.0  ;;  %v118_v7 = vmul.f32 %v275_v63, %v62_v46 }
  0x24   :  { %v279_v9 = vpop.eup %278  ;;  %v92_v10 = vadd.f32 %v271_v60, %v91_v6  ;;  %v119_v11 = vmul.f32 %v277_v4, %v63_v47  ;;  %v123_v12 = vsel %vm26_vm0, %v117_v3, 0.0 }
  0x25   :  { %v281_v13 = vpop.eup %280  ;;  %v85_v14 = vrot.slane %v84_v5, 4  ;;  %v120_v15 = vmul.f32 %v279_v9, %v64_v48  ;;  %v124_v16 = vadd.f32 %v123_v12, %v115_v62  ;;  %v131_v17 = vsel %vm26_vm0, %v118_v7, 0.0 }
  0x26   :  { %v283_v18 = vpop.eup %282  ;;  %v93_v19 = vrot.slane %v92_v10, 4  ;;  %v99_v20 = vsel %vm26_vm0, %v281_v13, 0.0  ;;  %v121_v21 = vmul.f32 %v281_v13, %v65_v49  ;;  %v132_v22 = vadd.f32 %v131_v17, %v116_v2 }
  0x27   :  { %v86_v23 = vadd.f32 %v85_v14, %v84_v5  ;;  %v100_v24 = vadd.f32 %v277_v4, %v99_v20  ;;  %v107_v25 = vsel %vm26_vm0, %v283_v18, 0.0  ;;  %v122_v26 = vmul.f32 %v283_v18, %v66_v53 }
  0x28   :  { %v94_v27 = vadd.f32 %v93_v19, %v92_v10  ;;  %v108_v28 = vadd.f32 %v279_v9, %v107_v25  ;;  %v125_v29 = vrot.slane %v124_v16, 4  ;;  %v133_v30 = vrot.slane %v132_v22, 4 }
  0x29   :  { %v87_v31 = vrot.slane %v86_v23, 2  ;;  %v101_v32 = vrot.slane %v100_v24, 4  ;;  %v139_v33 = vsel %vm26_vm0, %v121_v21, 0.0  ;;  %v147_v34 = vsel %vm26_vm0, %v122_v26, 0.0 }
  0x2a   :  { %v95_v35 = vrot.slane %v94_v27, 2  ;;  %v109_v36 = vrot.slane %v108_v28, 4  ;;  %v126_v37 = vadd.f32 %v125_v29, %v124_v16  ;;  %v134_v38 = vadd.f32 %v133_v30, %v132_v22 }
  0x2b   :  { %v88_v39 = vadd.f32 %v87_v31, %v86_v23  ;;  %v102_v40 = vadd.f32 %v101_v32, %v100_v24  ;;  %v140_v41 = vadd.f32 %v139_v33, %v119_v11  ;;  %v148_v42 = vadd.f32 %v147_v34, %v120_v15 }
  0x2c   :  { %v96_v43 = vadd.f32 %v95_v35, %v94_v27  ;;  %v110_v44 = vadd.f32 %v109_v36, %v108_v28  ;;  %v127_v51 = vrot.slane %v126_v37, 2  ;;  %v135_v52 = vrot.slane %v134_v38, 2 }
  0x2d   :  { %v89_v45 = vrot.slane %v88_v39, 1  ;;  %v103_v46 = vrot.slane %v102_v40, 2  ;;  %v141_v47 = vrot.slane %v140_v41, 4  ;;  %v149_v48 = vrot.slane %v148_v42, 4 }
  0x2e   :  { %v97_v49 = vrot.slane %v96_v43, 1  ;;  %v111_v50 = vrot.slane %v110_v44, 2  ;;  %v128_v61 = vadd.f32 %v127_v51, %v126_v37  ;;  %v136_v1 = vadd.f32 %v135_v52, %v134_v38 }
  0x2f   :  { %v90_v53 = vadd.f32 %v89_v45, %v88_v39  ;;  %v104_v54 = vadd.f32 %v103_v46, %v102_v40  ;;  %v142_v55 = vadd.f32 %v141_v47, %v140_v41  ;;  %v150_v56 = vadd.f32 %v149_v48, %v148_v42 }
  0x30   :  { %v98_v57 = vadd.f32 %v97_v49, %v96_v43  ;;  %v112_v58 = vadd.f32 %v111_v50, %v110_v44  ;;  %v129_v4 = vrot.slane %v128_v61, 1  ;;  %v137_v6 = vrot.slane %v136_v1, 1 }
  0x31   :  { %v105_v59 = vrot.slane %v104_v54, 1  ;;  %284 = vlog2.f32 %v90_v53  ;;  %v143_v62 = vrot.slane %v142_v55, 2  ;;  %v151_v2 = vrot.slane %v150_v56, 2 }
  0x32   :  { %v113_v60 = vrot.slane %v112_v58, 1  ;;  %286 = vlog2.f32 %v98_v57  ;;  %v130_v9 = vadd.f32 %v129_v4, %v128_v61  ;;  %v138_v12 = vadd.f32 %v137_v6, %v136_v1 }
  0x33   :  { %v106_v63 = vadd.f32 %v105_v59, %v104_v54  ;;  %288 = vrcp.f32 %v90_v53  ;;  %v144_v5 = vadd.f32 %v143_v62, %v142_v55  ;;  %v152_v7 = vadd.f32 %v151_v2, %v150_v56 }
  0x34   :  { %v114_v3 = vadd.f32 %v113_v60, %v112_v58  ;;  %290 = vrcp.f32 %v98_v57  ;;  %v325_v43 = vmov 1966171168   ;;  %v201_v52 = vshrl.u32 %v13_v0, 7  ;;  %v191_v60 = vld [vmem:[#allocation2] sm:$0x3] }
  0x35   :  { %292 = vlog2.f32 %v106_v63  ;;  %v145_v10 = vrot.slane %v144_v5, 1  ;;  %v153_v13 = vrot.slane %v152_v7, 1  ;;  %v198_v44 = vunpack.c.l.s4 %v325_v43 }
  0x36   :  { %294 = vlog2.f32 %v114_v3  ;;  %v229_v1 = vsub.s32 1, %v201_v52 }
  0x37   :  { %296 = vrcp.f32 %v106_v63  ;;  %v146_v19 = vadd.f32 %v145_v10, %v144_v5  ;;  %v154_v22 = vadd.f32 %v153_v13, %v152_v7  ;;  %v199_v51 = vunpack.c.0.s8 %v198_v44 }
  0x38   :  { %298 = vrcp.f32 %v114_v3  ;;  %v225_v63 = vsub.s32 0, %v201_v52 }
  0x39   :  { %v202_v57 = vsub.s32 %v199_v51, %v201_v52 }
  0x3b   :  { %v285_v11 = vpop.eup %284 }
  0x3c   :  { %v287_v14 = vpop.eup %286  ;;  %v156_v15 = vmul.f32 0.6931472, %v285_v11 }
  0x3d   :  { %v289_v16 = vpop.eup %288  ;;  %v158_v17 = vmul.f32 0.6931472, %v287_v14 }
  0x3e   :  { %v291_v18 = vpop.eup %290  ;;  %v167_v20 = vmul.f32 %v289_v16, %v130_v9 }
  0x3f   :  { %v293_v21 = vpop.eup %292  ;;  %v168_v23 = vmul.f32 %v291_v18, %v138_v12 }
  0x40   :  { %v295_v24 = vpop.eup %294  ;;  %v160_v25 = vmul.f32 0.6931472, %v293_v21  ;;  %v171_v26 = vsub.f32 %v156_v15, %v167_v20 }
  0x41   :  { %v297_v27 = vpop.eup %296  ;;  %v162_v28 = vmul.f32 0.6931472, %v295_v24  ;;  %v172_v29 = vsub.f32 %v158_v17, %v168_v23 }
  0x42   :  { %v299_v30 = vpop.eup %298  ;;  %v169_v31 = vmul.f32 %v297_v27, %v146_v19  ;;  %v175_v32 = vmul.f32 0.38987124, %v171_v26 }
  0x43   :  { %v170_v33 = vmul.f32 %v299_v30, %v154_v22  ;;  %v176_v34 = vmul.f32 0.38987124, %v172_v29 }
  0x44   :  { %v173_v35 = vsub.f32 %v160_v25, %v169_v31  ;;  %v179_v36 = vmul.f32 %v175_v32, %v175_v32 }
  0x45   :  { %v174_v37 = vsub.f32 %v162_v28, %v170_v33  ;;  %v180_v38 = vmul.f32 %v176_v34, %v176_v34 }
  0x46   :  { %v177_v39 = vmul.f32 0.38987124, %v173_v35  ;;  %v183_v40 = vadd.f32 1e-08, %v179_v36 }
  0x47   :  { %v178_v41 = vmul.f32 0.38987124, %v174_v37  ;;  %v184_v42 = vadd.f32 1e-08, %v180_v38 }
  0x48   :  { %v181_v45 = vmul.f32 %v177_v39, %v177_v39  ;;  %v187_v48 = vmul.f32 %v183_v40, %v183_v40 }
  0x49   :  { %v182_v46 = vmul.f32 %v178_v41, %v178_v41  ;;  %v188_v50 = vmul.f32 %v184_v42, %v184_v42 }
  0x4a   :  { %v185_v47 = vadd.f32 1e-08, %v181_v45 }
  0x4b   :  { %v186_v49 = vadd.f32 1e-08, %v182_v46 }
  0x4c   :  { %v189_v53 = vmul.f32 %v185_v47, %v185_v47 }
  0x4d   :  { %v190_v54 = vmul.f32 %v186_v49, %v186_v49 }
  0x4e   :  { %v192_v55 = vadd.f32 %v189_v53, %v187_v48 }
  0x4f   :  { %v193_v56 = vadd.f32 %v190_v54, %v188_v50 }
  0x51   :  { %v196_v58 = vcombine.low %v192_v55, %v193_v56 }
  0x53   :  { %v203_v59 = vrot.slane %v196_v58, %v202_v57 }
  0x55   :  { %v210_v61 = vrot.slane %v203_v59, %v202_v57 }
  0x57   :  { %v212_v62 = vadd.f32 %v210_v61, %v191_v60 }
  0x59   :  { %217 = vst.msk [vmem:[#allocation2] sm:$0x3] %vm357_vm1, %v212_v62 }
  0x60   :  { %v221_v2 = vld [vmem:[#allocation2] sm:$0x3] }
  0x61   :  { %v226_v3 = vrot.slane %v221_v2, %v225_v63  ;;  %v230_v4 = vrot.slane %v221_v2, %v229_v1 }
  0x63   :  { %v234_v0 = vsel %vm233_vm2, %v226_v3, 0.0  ;;  %v235_v5 = vsel %vm233_vm2, %v230_v4, 0.0 }
  0x64   :  { %v236_v6 = vadd.f32 %v235_v5, %v234_v0 }
  0x66   :  { %237 = vadd.xlane.f32.xlu0 %v236_v6 }
  0xf3   :  { %v238_v7 = vpop.xlane.xlu0 %237 }
  0xf4   :  { %v239_v9 = vrot.slane %v238_v7, 4 }
  0xf6   :  { %v240_v10 = vadd.f32 %v239_v9, %v238_v7 }
  0xf8   :  { %v241_v11 = vrot.slane %v240_v10, 2 }
  0xfa   :  { %v242_v12 = vadd.f32 %v241_v11, %v240_v10 }
  0xfc   :  { %v243_v13 = vrot.slane %v242_v12, 1 }
  0xfe   :  { %v244_v14 = vadd.f32 %v243_v13, %v242_v12 }
 0x100   :  { %263 = vpush %v244_v14 }
 0x131   :  { %s264_s23 = spop %263 }
 0x132   :  { %v246_v8 = vstv %s264_s23 }
 0x133   :  { %v247_v15 = vmul.f32 9.765625e-06, %v246_v8 }
 0x135   :  { %248 = vst [vmem:[#allocation3] sm:$0xff] %v247_v15 }
 0x136   :  { %311 = shalt.err (!%p308_p4)
}
 0x137   :  { %s312_s27 = scalar_lea.hbm %s396_s1, 128 }
 0x138   :  { %p313_p5 = scmp.ne.s32.totalorder %s396_s1, %s312_s27  ;;  %p316_p6 = scmp.lt.u32.totalorder %s312_s27, %s396_s1 }
 0x13a   :  { %p318_p7 = pnand %p316_p6, %p313_p5 }
 0x13c   :  { %321 = shalt.err (!%p318_p7)
}
 0x13d   :  { %258 = dma.vmem_to_hbm [thread:$0]  %s256_s22, 128, %s396_s1, [#allocation4]  }
 0x13e   :  { %322 = dma.done.wait [#allocation4], 128  }
 0x13f   :  { %323 = vsyncadd [#allocation4], 4294967168 }
 0x140   :  { %262 = vsyncpa [#allocation4], 1 }

</bundles_post_ra>
